<compile_context>
chip_gen: v6e
topology: v6e:2x2x1
jax: 0.10.0
libtpu: 0.0.40
codegen_flags: <defaults>
</compile_context>

<pallas_src>
import math
from functools import partial

import jax
import jax.numpy as jnp
from jax import lax
from jax.experimental import pallas as pl
from jax.experimental.pallas import tpu as pltpu


def _round_up(x, m):
    return ((x + m - 1) // m) * m


def _vmem_capacity_bytes():
    """Physical VMEM of this generation; conservative 64 MiB (v7x) fallback."""
    try:
        cap = int(pltpu.get_tpu_info().vmem_capacity_bytes)
        if cap > 0:
            return cap
    except Exception:
        pass
    return 64 * 2**20


def _make_gcn_kernel(*, apply_w, dot_dtype):
    if apply_w:
        def kernel(a_ref, xs_mm_ref, xs_row_ref, dinv_row_ref, w_ref, o_ref):
            # a_ref:        (tm, N_pad)        streamed raw-A row tile (MXU dtype)
            # xs_mm_ref:    (N_pad, B*c_pad)   resident dinv-scaled X (MXU dtype)
            # xs_row_ref:   (tm, B*c_pad)      f32 rows of dinv-scaled X (+I term)
            # dinv_row_ref: (tm, 1)            f32 dinv for these rows
            # w_ref:        (B*c_pad, B*o_pad) block-diag(W), MXU dtype
            # o_ref:        (tm, B*o_pad)
            s = jnp.dot(a_ref[...], xs_mm_ref[...],
                        preferred_element_type=jnp.float32)          # MXU
            t = dinv_row_ref[...] * (s + xs_row_ref[...])            # f32 VPU
            out = jnp.dot(t.astype(dot_dtype), w_ref[...],
                          preferred_element_type=jnp.float32)        # MXU
            o_ref[...] = out.astype(o_ref.dtype)
    else:
        def kernel(a_ref, xs_mm_ref, xs_row_ref, dinv_row_ref, o_ref):
            s = jnp.dot(a_ref[...], xs_mm_ref[...],
                        preferred_element_type=jnp.float32)          # MXU
            t = dinv_row_ref[...] * (s + xs_row_ref[...])            # f32 VPU
            o_ref[...] = t.astype(o_ref.dtype)
    return kernel


@partial(jax.jit, static_argnames=("mxu_dtype", "pad_lanes"))
def gcn_conv(X, A, W, *, mxu_dtype=jnp.bfloat16, pad_lanes=True):
    """GCNConv forward. X: (B, N, Cin), A: (N, N), W: (Cin, Cout) -> (B, N, Cout)."""
    B, N, Cin = X.shape
    assert A.shape == (N, N)
    Cin_w, Cout = W.shape
    assert Cin_w == Cin
    f32 = jnp.float32
    mm_bytes = jnp.dtype(mxu_dtype).itemsize

    # ---- lane padding: folded widths B*c become multiples of 128 (lane-dense
    #      MXU RHS and unmasked output stores); padding sliced off at the end.
    lane_q = (128 // math.gcd(B, 128)) if pad_lanes else 1
    cin_pad = _round_up(Cin, lane_q)
    cout_pad = _round_up(Cout, lane_q)

    # ---- matmul ordering: run the dominant N x N matmul at min(Cin, Cout)
    #      width; avoid kron(eye(B), W) when it would get large (B^2 growth).
    w_bd_elems = (B * cin_pad) * (B * cout_pad)
    apply_w = (Cin <= Cout) and (w_bd_elems * mm_bytes <= 4 * 2**20)

    if apply_w:
        feats = X.astype(f32)                                      # (B, N, Cin)
        c, c_pad, out_c_pad = Cin, cin_pad, cout_pad
    else:
        feats = jnp.einsum('bnc,co->bno', X.astype(f32), W.astype(f32))
        c, c_pad, out_c_pad = Cout, cout_pad, cout_pad

    in_lanes = B * c_pad
    out_lanes = B * out_c_pad

    # ---- VMEM-aware, generation-aware row-tile choice (prefer >= 4 tiles so
    #      both v7x TensorCores get >= 2 pipelined steps each).
    vmem_cap = _vmem_capacity_bytes()
    budget = int(0.72 * vmem_cap)

    def _need(tm):
        n_pad = _round_up(N, tm)
        streamed = tm * (n_pad * mm_bytes      # A row tile
                         + in_lanes * 4        # f32 x_scaled row tile
                         + 4                   # dinv rows
                         + out_lanes * 4)      # output tile
        resident = n_pad * in_lanes * mm_bytes \
            + (w_bd_elems * mm_bytes if apply_w else 0)
        temps = tm * (in_lanes * (8 + mm_bytes) + out_lanes * 4)
        # streamed + residents counted at 2 buffers (default pipelining).
        return 2 * streamed + 2 * resident + temps

    cands = (512, 256, 128, 64, 32, 16, 8)
    fitting = [t for t in cands if _need(t) <= budget] or [8]
    tm = fitting[-1]
    for min_tiles in (4, 2, 1):
        found = False
        for t in fitting:
            if _round_up(N, t) // t >= min_tiles:
                tm = t
                found = True
                break
        if found:
            break

    N_pad = _round_up(N, tm)
    n_tiles = N_pad // tm

    # ---- grid-invariant preprocessing (one pass over A; padded rows get
    #      deg = 1 and zero features, so they produce zero outputs).
    A_pad = jnp.pad(A.astype(f32), ((0, N_pad - N), (0, N_pad - N)))
    deg = jnp.sum(A_pad, axis=1) + 1.0                  # A_hat degrees, no eye()
    deg = jnp.maximum(deg, 1e-4)                        # D[D <= 1e-4] = 1e-4
    dinv = lax.rsqrt(deg)                               # (N_pad,)
    dinv_col = dinv.reshape(N_pad, 1).astype(f32)

    feats_p = jnp.pad(feats, ((0, 0), (0, N_pad - N), (0, c_pad - c)))
    x2d = jnp.transpose(feats_p, (1, 0, 2)).reshape(N_pad, in_lanes)
    x_scaled_f32 = dinv_col * x2d                       # dinv-scaled X (f32)
    x_scaled_mm = x_scaled_f32.astype(mxu_dtype)        # resident MXU operand
    a_mm = A_pad.astype(mxu_dtype)                      # 0/1 exact in bf16

    kernel = _make_gcn_kernel(apply_w=apply_w, dot_dtype=mxu_dtype)

    in_specs = [
        pl.BlockSpec((tm, N_pad), lambda i: (i, 0)),         # A row tile (streamed)
        pl.BlockSpec((N_pad, in_lanes), lambda i: (0, 0)),   # x_scaled (resident, MXU dtype)
        pl.BlockSpec((tm, in_lanes), lambda i: (i, 0)),      # x_scaled rows, f32 (+I term)
        pl.BlockSpec((tm, 1), lambda i: (i, 0)),             # dinv rows
    ]
    args = [a_mm, x_scaled_mm, x_scaled_f32, dinv_col]
    if apply_w:
        W_pad = jnp.zeros((c_pad, out_c_pad), f32).at[:Cin, :Cout].set(W.astype(f32))
        w_bd = jnp.kron(jnp.eye(B, dtype=f32), W_pad).astype(mxu_dtype)
        in_specs.append(pl.BlockSpec((B * c_pad, B * out_c_pad), lambda i: (0, 0)))
        args.append(w_bd)

    need = _need(tm)
    vmem_limit = int(min(max(need + 4 * 2**20, 32 * 2**20), vmem_cap - 2 * 2**20))

    out2d = pl.pallas_call(
        kernel,
        out_shape=jax.ShapeDtypeStruct((N_pad, out_lanes), X.dtype),
        grid_spec=pltpu.PrefetchScalarGridSpec(
            num_scalar_prefetch=0,
            grid=(n_tiles,),
            in_specs=in_specs,
            out_specs=pl.BlockSpec((tm, out_lanes), lambda i: (i, 0)),
        ),
        compiler_params=pltpu.CompilerParams(
            dimension_semantics=("parallel",),
            vmem_limit_bytes=vmem_limit,
        ),
    )(*args)

    # Un-fold: (N_pad, B*out_c_pad) -> (B, N, Cout), dropping row/lane padding.
    out = out2d.reshape(N_pad, B, out_c_pad)[:N, :, :Cout]
    return jnp.transpose(out, (1, 0, 2))


def gcn_reference(X, A, W):
    """Pure-JAX reference mirroring the PyTorch forward exactly (f32)."""
    N = A.shape[0]
    A_hat = A + jnp.eye(N, dtype=A.dtype)
    D = A_hat.sum(axis=1)
    D = jnp.where(D <= 1e-4, 1e-4, D)
    dinv = 1.0 / jnp.sqrt(D)
    A_wave = dinv[:, None] * A_hat * dinv[None, :]
    t = jnp.einsum('ij,bjl->bil', A_wave, X)
    return t @ W


if __name__ == "__main__":
    key = jax.random.PRNGKey(0)
    kx, ka, kw, kw2 = jax.random.split(key, 4)

    # Case 1: Cin <= Cout  (W applied inside the kernel after A_wave @ X).
    B, N, Cin, Cout = 2, 16, 8, 32
    X = jax.random.normal(kx, (B, N, Cin), dtype=jnp.float32)
    A = (jax.random.uniform(ka, (N, N)) > 0.7).astype(jnp.float32)
    A = A * (1.0 - jnp.eye(N, dtype=jnp.float32))          # no self loops
    stdv = 1.0 / math.sqrt(Cout)
    W = jax.random.uniform(kw, (Cin, Cout), dtype=jnp.float32,
                           minval=-stdv, maxval=stdv)

    out = jax.block_until_ready(gcn_conv(X, A, W))
    ref = gcn_reference(X, A, W)
    assert out.shape == (B, N, Cout)
    # bf16 MXU operands with f32 accumulation -> compare at bf16-level tolerance.
    assert jnp.allclose(out, ref, atol=2e-2, rtol=2e-2), "mismatch (Cin<=Cout)"

    # Case 2: Cout < Cin  (W folded in before the dominant N x N matmul).
    Cin2, Cout2 = 32, 8
    X2 = jax.random.normal(kx, (B, N, Cin2), dtype=jnp.float32)
    stdv2 = 1.0 / math.sqrt(Cout2)
    W2 = jax.random.uniform(kw2, (Cin2, Cout2), dtype=jnp.float32,
                            minval=-stdv2, maxval=stdv2)
    out2 = jax.block_until_ready(gcn_conv(X2, A, W2))
    ref2 = gcn_reference(X2, A, W2)
    assert out2.shape == (B, N, Cout2)
    assert jnp.allclose(out2, ref2, atol=2e-2, rtol=2e-2), "mismatch (Cout<Cin)"

    print("KERNEL_OK")
</pallas_src>

<mosaic_0001>
module attributes {stable_mosaic.version = 11 : i64} {
  func.func @kernel(%arg0: i32, %arg1: memref<8x16xbf16, #tpu.memory_space<vmem>>, %arg2: memref<16x128xbf16, #tpu.memory_space<vmem>>, %arg3: memref<8x128xf32, #tpu.memory_space<vmem>>, %arg4: memref<8x1xf32, #tpu.memory_space<vmem>>, %arg5: memref<128x128xbf16, #tpu.memory_space<vmem>>, %arg6: memref<8x128xf32, #tpu.memory_space<vmem>>) attributes {dimension_semantics = [#tpu.dimension_semantics<parallel>], iteration_bounds = array<i64: 2>, scalar_prefetch = 0 : i64, scratch_operands = 0 : i64, tpu.core_type = #tpu.core_type<tc>, window_params = [{transform_indices = @transform_0, window_bounds = array<i64: 8, 16>}, {pipeline_mode = #tpu.pipeline_mode<synchronous>, transform_indices = @transform_1, window_bounds = array<i64: 16, 128>}, {transform_indices = @transform_2, window_bounds = array<i64: 8, 128>}, {transform_indices = @transform_3, window_bounds = array<i64: 8, 1>}, {pipeline_mode = #tpu.pipeline_mode<synchronous>, transform_indices = @transform_4, window_bounds = array<i64: 128, 128>}, {transform_indices = @transform_5, window_bounds = array<i64: 8, 128>}]} {
    %c0 = arith.constant 0 : index
    %c0_0 = arith.constant 0 : index
    %0 = vector.load %arg1[%c0, %c0_0] : memref<8x16xbf16, #tpu.memory_space<vmem>>, vector<8x16xbf16>
    %c0_1 = arith.constant 0 : index
    %c0_2 = arith.constant 0 : index
    %1 = vector.load %arg2[%c0_1, %c0_2] : memref<16x128xbf16, #tpu.memory_space<vmem>>, vector<16x128xbf16>
    %cst = arith.constant dense<0.000000e+00> : vector<8x128xf32>
    %2 = tpu.matmul %0, %1, %cst {dimension_numbers = #tpu.dot_dimension_numbers<[1], [0], [0], [1], [0, 0, 1, 1], [], []>} : vector<8x16xbf16>, vector<16x128xbf16>, vector<8x128xf32> -> vector<8x128xf32>
    %c0_3 = arith.constant 0 : index
    %c0_4 = arith.constant 0 : index
    %3 = vector.load %arg4[%c0_3, %c0_4] : memref<8x1xf32, #tpu.memory_space<vmem>>, vector<8x1xf32>
    %c0_5 = arith.constant 0 : index
    %c0_6 = arith.constant 0 : index
    %4 = vector.load %arg3[%c0_5, %c0_6] : memref<8x128xf32, #tpu.memory_space<vmem>>, vector<8x128xf32>
    %5 = arith.addf %2, %4 : vector<8x128xf32>
    %6 = vector.broadcast %3 : vector<8x1xf32> to vector<8x128xf32>
    %7 = arith.mulf %6, %5 : vector<8x128xf32>
    %8 = arith.truncf %7 : vector<8x128xf32> to vector<8x128xbf16>
    %c0_7 = arith.constant 0 : index
    %c0_8 = arith.constant 0 : index
    %9 = vector.load %arg5[%c0_7, %c0_8] : memref<128x128xbf16, #tpu.memory_space<vmem>>, vector<128x128xbf16>
    %cst_9 = arith.constant dense<0.000000e+00> : vector<8x128xf32>
    %10 = tpu.matmul %8, %9, %cst_9 {dimension_numbers = #tpu.dot_dimension_numbers<[1], [0], [0], [1], [0, 0, 1, 1], [], []>} : vector<8x128xbf16>, vector<128x128xbf16>, vector<8x128xf32> -> vector<8x128xf32>
    %c0_10 = arith.constant 0 : index
    %c0_11 = arith.constant 0 : index
    %11 = vector.load %arg6[%c0_10, %c0_11] : memref<8x128xf32, #tpu.memory_space<vmem>>, vector<8x128xf32>
    tpu.vector_store %arg6[%c0_10, %c0_11], %10 {strides = array<i32>} : memref<8x128xf32, #tpu.memory_space<vmem>>, vector<8x128xf32>,
    return
  }
  func.func @transform_0(%arg0: i32) -> (i32, i32) {
    %c0_i32 = arith.constant 0 : i32
    %c0_i32_0 = arith.constant 0 : i32
    return %arg0, %c0_i32 : i32, i32
  }
  func.func @transform_1(%arg0: i32) -> (i32, i32) {
    %c0_i32 = arith.constant 0 : i32
    %c0_i32_0 = arith.constant 0 : i32
    %c0_i32_1 = arith.constant 0 : i32
    return %c0_i32, %c0_i32_0 : i32, i32
  }
  func.func @transform_2(%arg0: i32) -> (i32, i32) {
    %c0_i32 = arith.constant 0 : i32
    %c0_i32_0 = arith.constant 0 : i32
    return %arg0, %c0_i32 : i32, i32
  }
  func.func @transform_3(%arg0: i32) -> (i32, i32) {
    %c0_i32 = arith.constant 0 : i32
    %c0_i32_0 = arith.constant 0 : i32
    return %arg0, %c0_i32 : i32, i32
  }
  func.func @transform_4(%arg0: i32) -> (i32, i32) {
    %c0_i32 = arith.constant 0 : i32
    %c0_i32_0 = arith.constant 0 : i32
    %c0_i32_1 = arith.constant 0 : i32
    return %c0_i32, %c0_i32_0 : i32, i32
  }
  func.func @transform_5(%arg0: i32) -> (i32, i32) {
    %c0_i32 = arith.constant 0 : i32
    %c0_i32_0 = arith.constant 0 : i32
    return %arg0, %c0_i32 : i32, i32
  }
}

</mosaic_0001>

<bundles_post_ra>
// kernel: gcn_conv.1
= control target key start
LH: loop header
LB: loop body
LE: loop exit
PB: predicated region body
PF: predicated region fallthrough
CT: control target
= control target key end

     0   :  { %s619_s18 = smov 0   ;;  %s674_s0 = inlined_call_operand.vmem [shape: bf16[16,16], index: 0, kind: input, shape index: {}]   ;;  %s675_s1 = inlined_call_operand.vmem [shape: bf16[16,128], index: 1, kind: input, shape index: {}]   ;;  %s676_s2 = inlined_call_operand.vmem [shape: f32[16,128], index: 2, kind: input, shape index: {}]   ;;  %s677_s3 = inlined_call_operand.vmem [shape: f32[16,1], index: 3, kind: input, shape index: {}]   ;;  %s678_s4 = inlined_call_operand.vmem [shape: bf16[128,128], index: 4, kind: input, shape index: {}]   ;;  %s679_s5 = inlined_call_operand.vmem [shape: f32[16,128], index: 5, kind: output, shape index: {}]  }
   0x1 LB: > { %s499_s19 = sadd.s32 4294967295, %s584_s18   ;;  %p503_p0 = scmp.ge.s32.totalorder %s584_s18, 1  ;;  %s584_s18 = sphi %s619_s18, %s15_s18  }
   0x2   : > { %p204_p1 = scmp.lt.s32.totalorder %s584_s18, 3 }
   0x4   : > { %p205_p2 = pnand %p503_p0, %p204_p1 }
   0x5   : > { %p238_p3 = scmp.lt.s32.totalorder (!%p205_p2), %s499_s19, 1 }
   0x6   : > { %208 = sbr.rel (%p205_p2) target bundleno = 414 (0x19e), region = 40 }
   0xb   : > { %v569_v0 = vld [vmem:[%s675_s1] sm:$0xff]   ;;  %v586_v1 = vmov 0.0   ;;  %vm587_vm0 = vmmov 0   ;;  %v570_v2 = vld [vmem:[%s678_s4 + $0x38] sm:$0xff]   ;;  %s681_s19 = smov (!%p238_p3, %s499_s19), 1  ;;  %v588_v3 = vmov 0  }
   0xc   : > { %531 = vmatprep.subr.bf16.mxu0 %v586_v1  ;;  %537 = vmatprep.subr.bf16.mxu1 %v586_v1  ;;  %s504_s24 = sshll.u32 %s681_s19, 2  ;;  %vm266_vm1 = vcmask 130048   ;;  %s633_s25 = sshll.u32 %s681_s19, 3  ;;  %v571_v4 = vld [vmem:[%s678_s4 + $0x30] sm:$0xff]   ;;  %v572_v7 = vld [vmem:[%s678_s4 + $0x28] sm:$0xff]   ;;  %v573_v8 = vld [vmem:[%s678_s4 + $0x20] sm:$0xff]  }
   0xd   : > { %532 = vmatpush3.bf16.msra.mxu0 %v569_v0  ;;  %533 = vmatprep.mubr.msk.bf16.mxu0 %vm587_vm0, %v586_v1  ;;  %s241_s30 = scalar_lea.vmem %s674_s0, %s504_s24  ;;  %s249_s8 = scalar_lea.vmem %s677_s3, %s633_s25  ;;  %v574_v9 = vld [vmem:[%s678_s4 + $0x18] sm:$0xff]   ;;  %v575_v10 = vld [vmem:[%s678_s4 + $0x10] sm:$0xff]   ;;  %v576_v11 = vld [vmem:[%s678_s4 + $0x8] sm:$0xff]  }
   0xe   : > { %568 = vset.pattern.permute.xlu0 %v588_v3  ;;  %553 = vmatprep.mubr.msk.bf16.mxu1 %vm587_vm0, %v586_v1  ;;  %v255_v5 = vld [vmem:[%s241_s30] sm:$0xf]  ;;  %s245_s24 = scalar_lea.vmem %s676_s2, %s633_s25  ;;  %s253_s28 = scalar_lea.vmem %s679_s5, %s633_s25 }
   0xf   : > { %538 = vmatpush3.bf16.msra.mxu1 %v570_v2  ;;  %v258_v6 = vld [vmem:[%s249_s8] sm:$0xff] }
  0x10   : > { %539 = vmatprep.subr.bf16.mxu1 %v586_v1  ;;  %534 = vmatmul.mubr.msk.bf16.vlgmr.msra.gmra.mxu0 %vm266_vm1, %v255_v5  ;;  %v577_v12 = vld [vmem:[%s678_s4] sm:$0xff]  }
  0x11   : > { %312 = vperm.xlu0 %568, %v258_v6   ;;  %v259_v13 = vld [vmem:[%s245_s24] sm:$0xff] }
  0x13   : > { %540 = vmatpush3.bf16.msra.mxu1 %v571_v4 }
  0x14   : > { %541 = vmatprep.subr.bf16.mxu1 %v586_v1 }
  0x17   : > { %542 = vmatpush3.bf16.msra.mxu1 %v572_v7 }
  0x18   : > { %543 = vmatprep.subr.bf16.mxu1 %v586_v1 }
  0x1b   : > { %544 = vmatpush3.bf16.msra.mxu1 %v573_v8 }
  0x1c   : > { %545 = vmatprep.subr.bf16.mxu1 %v586_v1 }
  0x1f   : > { %546 = vmatpush3.bf16.msra.mxu1 %v574_v9 }
  0x20   : > { %547 = vmatprep.subr.bf16.mxu1 %v586_v1 }
  0x23   : > { %548 = vmatpush3.bf16.msra.mxu1 %v575_v10 }
  0x24   : > { %549 = vmatprep.subr.bf16.mxu1 %v586_v1 }
  0x27   : > { %550 = vmatpush3.bf16.msra.mxu1 %v576_v11 }
  0x28   : > { %551 = vmatprep.subr.bf16.mxu1 %v586_v1 }
  0x2b   : > { %552 = vmatpush3.bf16.msra.mxu1 %v577_v12 }
  0x8c   : > { %v313_v15 = vpop.permute.xlu0 %312 }
  0xd0   : > { %v304_v14 = vpop.f32.mrf.mxu0 }
  0xd1   : > { %v305_v16 = vadd.f32 %v304_v14, %v259_v13 }
  0xd2   : > { %v535_v17 = vpop.f32.mrf.mxu0 }
  0xd3   : > { %v315_v18 = vmul.f32 %v313_v15, %v305_v16 }
  0xd4   : > { %v307_v19 = vpop.f32.mrf.mxu0 }
  0xd5   : > { %v316_v20 = vpack.c.bf16 %v315_v18, %v315_v18 }
  0xd6   : > { %v536_v21 = vpop.f32.mrf.mxu0 }
  0xd7   : > { %554 = vmatmul.mubr.bf16.vlgmr.msra.gmra.mxu1 %v316_v20 }
 0x197   : > { %v415_v22 = vpop.f32.mrf.mxu1 }
 0x198   : > { %421 = vst [vmem:[%s253_s28] sm:$0xff] %v415_v22 }
 0x199   : > { %v555_v23 = vpop.f32.mrf.mxu1 }
 0x19b   : > { %v418_v24 = vpop.f32.mrf.mxu1 }
 0x19d   : > { %v556_v25 = vpop.f32.mrf.mxu1 }
 0x19e PF: > { %s15_s18 = sadd.s32 1, %s584_s18  }
 0x19f   : > { %p12_p4 = scmp.ge.s32.totalorder %s15_s18, 4  }
 0x1a1   :  { %14 = sbr.rel (!%p12_p4) target bundleno = 1 (0x1), region = 76 }

</bundles_post_ra>
